<compile_context>
chip_gen: v6e
topology: v6e:2x2x1
jax: 0.10.0
libtpu: 0.0.40
codegen_flags: <defaults>
</compile_context>

<pallas_src>
import functools

import jax
import jax.numpy as jnp
from jax import lax
from jax.experimental import pallas as pl
from jax.experimental.pallas import tpu as pltpu


def residual_block_kernel(x_ref, wtop_ref, wmid_ref, wbot_ref, b3_ref,
                          wz1_ref, wzt_ref, bz_ref, out_ref, *, img_rows):
    """Batch-collapsed, lane-dense ResidualBlock body.

    x_ref   : (M, W*Cin)        M = images_per_block * H (batch folded into MXU M)
    wtop/wmid/wbot : (W*Cin, W*Cmid)  per-vertical-tap slices of the folded 3x3 conv
    b3_ref  : (1, W*Cmid)       conv3 bias tiled over W (f32)
    wz1_ref : (W*Cmid, W*Cout)  trunk 1x1 conv, kron(I_W, w1)
    wzt_ref : (W*Cin,  W*Cout)  lateral 1x1 conv, kron(I_W, wt)
    bz_ref  : (1, W*Cout)       b1 + bt tiled over W (f32)
    out_ref : (M, W*Cout)       lane-dense output (W*Cout == 128 at these shapes)
    """
    x = x_ref[...]                                  # (M, W*Cin) f32
    M = x.shape[0]
    H = img_rows

    # ReplicationPad2d along H: sublane rotations on the XLU + one-row edge
    # fixes at per-image boundaries (row index mod H).  No slice+concat copies.
    row = lax.broadcasted_iota(jnp.int32, x.shape, 0) % H
    up = jnp.where(row == 0, x, pltpu.roll(x, shift=1, axis=0))        # row h-1, clamped
    down = jnp.where(row == H - 1, x, pltpu.roll(x, shift=M - 1, axis=0))  # row h+1, clamped

    # 3x3 conv (W-direction replication pad folded into the weights) as three
    # accumulated MXU matmuls.  cdt == bf16 selects the native low-precision
    # MXU path with f32 accumulation; cdt == f32 is a no-op cast.
    cdt = wtop_ref.dtype
    conv = (jnp.dot(up.astype(cdt), wtop_ref[...], preferred_element_type=jnp.float32)
            + jnp.dot(x.astype(cdt), wmid_ref[...], preferred_element_type=jnp.float32)
            + jnp.dot(down.astype(cdt), wbot_ref[...], preferred_element_type=jnp.float32)
            + b3_ref[...])                           # (M, W*Cmid) f32

    # LeakyReLU (PyTorch default negative_slope = 0.01), fp32 on the VPU.
    y = jnp.where(conv > 0, conv, 0.01 * conv)

    # Fused trunk 1x1 + lateral 1x1 as two accumulated matmuls (no concat).
    out = (jnp.dot(y.astype(cdt), wz1_ref[...], preferred_element_type=jnp.float32)
           + jnp.dot(x.astype(cdt), wzt_ref[...], preferred_element_type=jnp.float32)
           + bz_ref[...])                            # (M, W*Cout) f32

    out_ref[...] = out.astype(out_ref.dtype)         # unmasked lane-dense store


def _fold_conv3x3_weights(w3, W, dtype):
    """Fold the 3x3 taps + ReplicationPad2d along W into three block-Toeplitz
    matrices (one per vertical tap dy), so that

        shifted_row(dy) @ result[dy]  ==  the dy-contribution of
        Conv3x3(edge_pad(x)) laid out as (H, W*Cmid).
    """
    def col_select(dx):
        # (W, W) with [c, w] = 1 iff c == clamp(w + dx - 1, 0, W-1)
        m = jnp.eye(W, W, k=1 - dx, dtype=jnp.float32)
        if dx == 0:
            m = m.at[0, 0].set(1.0)            # left edge replicated
        elif dx == 2:
            m = m.at[W - 1, W - 1].set(1.0)    # right edge replicated
        return m

    blocks = []
    for dy in range(3):
        blk = sum(jnp.kron(col_select(dx), w3[dy, dx].astype(jnp.float32))
                  for dx in range(3))          # (W*Cin, W*Cmid)
        blocks.append(blk.astype(dtype))
    return blocks


def prepare_params(params, W, weights_dtype=jnp.float32):
    """One-time weight packing — hoisted out of the per-forward hot path.

    NOTE(v7x): kron-folded weights scale O(W^2*C^2); at production W/C switch
    to a channels-on-lanes conv formulation instead of growing these.
    """
    f32 = jnp.float32
    w3, b3 = params["w3"], params["b3"]
    w1, b1 = params["w1"], params["b1"]
    wt, bt = params["wt"], params["bt"]

    w_top, w_mid, w_bot = _fold_conv3x3_weights(w3, W, weights_dtype)
    eye_w = jnp.eye(W, dtype=f32)
    wz1 = jnp.kron(eye_w, w1.astype(f32)).astype(weights_dtype)
    wzt = jnp.kron(eye_w, wt.astype(f32)).astype(weights_dtype)

    return dict(
        w_top=w_top, w_mid=w_mid, w_bot=w_bot,
        b3=jnp.tile(b3.astype(f32), W)[None, :],           # biases stay f32
        wz1=wz1, wzt=wzt,
        bz=jnp.tile((b1 + bt).astype(f32), W)[None, :],
    )


def _default_grid_blocks(n_images):
    """2 parallel grid steps on 2-TensorCore chips (v7x / megacore), else 1 so
    the whole batch fills a single MXU M dimension."""
    try:
        kind = jax.devices()[0].device_kind.lower()
    except Exception:
        kind = ""
    two_tc = any(tag in kind for tag in ("v7", "v4", "v5p"))
    if two_tc and n_images >= 2 and n_images % 2 == 0:
        return 2
    return 1


@functools.partial(jax.jit, static_argnames=("grid_blocks",))
def residual_block(x_nhwc, packed, grid_blocks=None):
    """x_nhwc: (N, H, W, Cin) float32.  Returns (N, H, W, Cout) float32."""
    N, H, W, Cin = x_nhwc.shape
    Cmid = packed["w_top"].shape[1] // W
    Cout = packed["wz1"].shape[1] // W
    f32 = jnp.float32

    if grid_blocks is None:
        grid_blocks = _default_grid_blocks(N)
    if N % grid_blocks != 0:
        grid_blocks = 1
    M = (N // grid_blocks) * H            # MXU M-fill per grid step

    # Batch collapsed onto the matmul M dim; W and C fused on the lane axis.
    # Contiguous reshape -> free.  (W*Cout == 128 here -> unmasked stores.)
    x2 = x_nhwc.astype(f32).reshape(N * H, W * Cin)

    wbytes = sum(int(packed[k].size) * packed[k].dtype.itemsize
                 for k in ("w_top", "w_mid", "w_bot", "wz1", "wzt", "b3", "bz"))
    cost = pl.CostEstimate(
        flops=2 * N * H * W * (9 * Cin * Cmid + (Cmid + Cin) * Cout),
        transcendentals=0,
        bytes_accessed=int(x2.size) * 4 + wbytes + N * H * W * Cout * 4,
    )

    kernel = functools.partial(residual_block_kernel, img_rows=H)

    out = pl.pallas_call(
        kernel,
        out_shape=jax.ShapeDtypeStruct((N * H, W * Cout), f32),
        grid_spec=pltpu.PrefetchScalarGridSpec(
            num_scalar_prefetch=0,
            grid=(grid_blocks,),
            in_specs=[
                pl.BlockSpec((M, W * Cin), lambda n: (n, 0)),
                # Grid-invariant weights/biases: constant index_map, fetched once.
                pl.BlockSpec((W * Cin, W * Cmid), lambda n: (0, 0)),
                pl.BlockSpec((W * Cin, W * Cmid), lambda n: (0, 0)),
                pl.BlockSpec((W * Cin, W * Cmid), lambda n: (0, 0)),
                pl.BlockSpec((1, W * Cmid), lambda n: (0, 0)),
                pl.BlockSpec((W * Cmid, W * Cout), lambda n: (0, 0)),
                pl.BlockSpec((W * Cin, W * Cout), lambda n: (0, 0)),
                pl.BlockSpec((1, W * Cout), lambda n: (0, 0)),
            ],
            out_specs=pl.BlockSpec((M, W * Cout), lambda n: (n, 0)),
        ),
        compiler_params=pltpu.CompilerParams(
            dimension_semantics=("parallel",)),
        cost_estimate=cost,
    )(x2, packed["w_top"], packed["w_mid"], packed["w_bot"], packed["b3"],
      packed["wz1"], packed["wzt"], packed["bz"])

    return out.reshape(N, H, W, Cout)


def init_params(key, in_channels, out_channels):
    """Deterministic synthetic weights, kernel layout (kH,kW,I,O) / (I,O)."""
    channels = min(in_channels, out_channels)
    k = jax.random.split(key, 6)
    w3 = jax.random.normal(k[0], (3, 3, in_channels, channels), jnp.float32) * 0.1
    b3 = jax.random.normal(k[1], (channels,), jnp.float32) * 0.1
    w1 = jax.random.normal(k[2], (channels, out_channels), jnp.float32) * 0.1
    b1 = jax.random.normal(k[3], (out_channels,), jnp.float32) * 0.1
    wt = jax.random.normal(k[4], (in_channels, out_channels), jnp.float32) * 0.1
    bt = jax.random.normal(k[5], (out_channels,), jnp.float32) * 0.1
    return dict(w3=w3, b3=b3, w1=w1, b1=b1, wt=wt, bt=bt)


def reference(x_nhwc, params):
    """Pure-JAX reference of the PyTorch forward (sampling=None, norm=None)."""
    xp = jnp.pad(x_nhwc, ((0, 0), (1, 1), (1, 1), (0, 0)), mode="edge")
    conv = lax.conv_general_dilated(
        xp, params["w3"], window_strides=(1, 1), padding="VALID",
        dimension_numbers=("NHWC", "HWIO", "NHWC"))
    conv = conv + params["b3"]
    y = jnp.where(conv > 0, conv, 0.01 * conv)
    trunk = jnp.einsum("nhwc,cd->nhwd", y, params["w1"]) + params["b1"]
    lat = jnp.einsum("nhwc,cd->nhwd", x_nhwc, params["wt"]) + params["bt"]
    return trunk + lat


if __name__ == "__main__":
    # Shapes consistent with the module (PyTorch NCHW x = (2, 4, 16, 16);
    # held here as NHWC = (2, 16, 16, 4)), Cout = 8.
    N, Cin, H, W = 2, 4, 16, 16
    Cout = 8

    key = jax.random.PRNGKey(0)
    kx, kp = jax.random.split(key)
    x_nchw = jax.random.normal(kx, (N, Cin, H, W), jnp.float32)
    x_nhwc = jnp.transpose(x_nchw, (0, 2, 3, 1))
    params = init_params(kp, Cin, Cout)

    with jax.default_matmul_precision("highest"):
        ref = reference(x_nhwc, params)

    # fp32 path (validated default).
    packed = prepare_params(params, W, weights_dtype=jnp.float32)
    out = residual_block(x_nhwc, packed)
    jax.block_until_ready(out)
    assert out.shape == (N, H, W, Cout)
    max_err = float(jnp.max(jnp.abs(out - ref)))
    assert jnp.allclose(out, ref, atol=1e-3, rtol=1e-3), max_err

    # bf16-weight path (halves weight DMA; native-rate MXU on v6e/v7x) with a
    # loosened tolerance, as flagged in the review.
    packed_bf16 = prepare_params(params, W, weights_dtype=jnp.bfloat16)
    out_bf16 = residual_block(x_nhwc, packed_bf16)
    jax.block_until_ready(out_bf16)
    max_err_bf16 = float(jnp.max(jnp.abs(out_bf16 - ref)))
    assert jnp.allclose(out_bf16, ref, atol=1e-1, rtol=1e-1), max_err_bf16

    print("KERNEL_OK")
</pallas_src>

<mosaic_0001>
module attributes {stable_mosaic.version = 11 : i64} {
  func.func @residual_block_kernel(%arg0: i32, %arg1: memref<32x64xf32, #tpu.memory_space<vmem>>, %arg2: memref<64x64xf32, #tpu.memory_space<vmem>>, %arg3: memref<64x64xf32, #tpu.memory_space<vmem>>, %arg4: memref<64x64xf32, #tpu.memory_space<vmem>>, %arg5: memref<1x64xf32, #tpu.memory_space<vmem>>, %arg6: memref<64x128xf32, #tpu.memory_space<vmem>>, %arg7: memref<64x128xf32, #tpu.memory_space<vmem>>, %arg8: memref<1x128xf32, #tpu.memory_space<vmem>>, %arg9: memref<32x128xf32, #tpu.memory_space<vmem>>) attributes {dimension_semantics = [#tpu.dimension_semantics<parallel>], iteration_bounds = array<i64: 1>, scalar_prefetch = 0 : i64, scratch_operands = 0 : i64, tpu.core_type = #tpu.core_type<tc>, window_params = [{transform_indices = @transform_0, window_bounds = array<i64: 32, 64>}, {pipeline_mode = #tpu.pipeline_mode<synchronous>, transform_indices = @transform_1, window_bounds = array<i64: 64, 64>}, {pipeline_mode = #tpu.pipeline_mode<synchronous>, transform_indices = @transform_2, window_bounds = array<i64: 64, 64>}, {pipeline_mode = #tpu.pipeline_mode<synchronous>, transform_indices = @transform_3, window_bounds = array<i64: 64, 64>}, {pipeline_mode = #tpu.pipeline_mode<synchronous>, transform_indices = @transform_4, window_bounds = array<i64: 1, 64>}, {pipeline_mode = #tpu.pipeline_mode<synchronous>, transform_indices = @transform_5, window_bounds = array<i64: 64, 128>}, {pipeline_mode = #tpu.pipeline_mode<synchronous>, transform_indices = @transform_6, window_bounds = array<i64: 64, 128>}, {pipeline_mode = #tpu.pipeline_mode<synchronous>, transform_indices = @transform_7, window_bounds = array<i64: 1, 128>}, {transform_indices = @transform_8, window_bounds = array<i64: 32, 128>}]} {
    %c0 = arith.constant 0 : index
    %c0_0 = arith.constant 0 : index
    %0 = vector.load %arg1[%c0, %c0_0] : memref<32x64xf32, #tpu.memory_space<vmem>>, vector<32x64xf32>
    %1 = tpu.iota {dimensions = array<i32: 0>} : vector<32x64xi32>
    %c16_i32 = arith.constant 16 : i32
    %c0_i32 = arith.constant 0 : i32
    %2 = arith.cmpi eq, %c16_i32, %c0_i32 : i32
    %c1_i32 = arith.constant 1 : i32
    %3 = arith.select %2, %c1_i32, %c16_i32 : i32
    %4 = vector.broadcast %3 : i32 to vector<32x64xi32>
    %5 = arith.remsi %1, %4 : vector<32x64xi32>
    %c0_i32_1 = arith.constant 0 : i32
    %6 = vector.broadcast %c0_i32_1 : i32 to vector<32x64xi32>
    %7 = arith.cmpi ne, %5, %6 : vector<32x64xi32>
    %c0_i32_2 = arith.constant 0 : i32
    %8 = vector.broadcast %c0_i32_2 : i32 to vector<32x64xi32>
    %9 = arith.cmpi slt, %5, %8 : vector<32x64xi32>
    %c0_i32_3 = arith.constant 0 : i32
    %10 = arith.cmpi slt, %3, %c0_i32_3 : i32
    %11 = vector.broadcast %10 : i1 to vector<32x64xi1>
    %12 = vector.broadcast %11 : vector<32x64xi1> to vector<32x64xi1>
    %13 = arith.xori %9, %12 : vector<32x64xi1>
    %14 = arith.andi %13, %7 : vector<32x64xi1>
    %15 = vector.broadcast %3 : i32 to vector<32x64xi32>
    %16 = arith.addi %5, %15 : vector<32x64xi32>
    %17 = arith.select %14, %16, %5 : vector<32x64xi1>, vector<32x64xi32>
    %c0_i32_4 = arith.constant 0 : i32
    %18 = vector.broadcast %c0_i32_4 : i32 to vector<32x64xi32>
    %19 = arith.cmpi eq, %17, %18 : vector<32x64xi32>
    %c1_i32_5 = arith.constant 1 : i32
    %20 = tpu.dynamic_rotate %0 by %c1_i32_5 dim 0 : vector<32x64xf32>, i32 -> vector<32x64xf32>
    %21 = arith.select %19, %0, %20 : vector<32x64xi1>, vector<32x64xf32>
    %c15_i32 = arith.constant 15 : i32
    %22 = vector.broadcast %c15_i32 : i32 to vector<32x64xi32>
    %23 = arith.cmpi eq, %17, %22 : vector<32x64xi32>
    %c31_i32 = arith.constant 31 : i32
    %24 = tpu.dynamic_rotate %0 by %c31_i32 dim 0 : vector<32x64xf32>, i32 -> vector<32x64xf32>
    %25 = arith.select %23, %0, %24 : vector<32x64xi1>, vector<32x64xf32>
    %c0_6 = arith.constant 0 : index
    %c0_7 = arith.constant 0 : index
    %26 = vector.load %arg2[%c0_6, %c0_7] : memref<64x64xf32, #tpu.memory_space<vmem>>, vector<64x64xf32>
    %cst = arith.constant dense<0.000000e+00> : vector<32x64xf32>
    %27 = tpu.matmul %21, %26, %cst {dimension_numbers = #tpu.dot_dimension_numbers<[1], [0], [0], [1], [0, 0, 1, 1], [], []>} : vector<32x64xf32>, vector<64x64xf32>, vector<32x64xf32> -> vector<32x64xf32>
    %c0_8 = arith.constant 0 : index
    %c0_9 = arith.constant 0 : index
    %28 = vector.load %arg3[%c0_8, %c0_9] : memref<64x64xf32, #tpu.memory_space<vmem>>, vector<64x64xf32>
    %cst_10 = arith.constant dense<0.000000e+00> : vector<32x64xf32>
    %29 = tpu.matmul %0, %28, %cst_10 {dimension_numbers = #tpu.dot_dimension_numbers<[1], [0], [0], [1], [0, 0, 1, 1], [], []>} : vector<32x64xf32>, vector<64x64xf32>, vector<32x64xf32> -> vector<32x64xf32>
    %30 = arith.addf %27, %29 : vector<32x64xf32>
    %c0_11 = arith.constant 0 : index
    %c0_12 = arith.constant 0 : index
    %31 = vector.load %arg4[%c0_11, %c0_12] : memref<64x64xf32, #tpu.memory_space<vmem>>, vector<64x64xf32>
    %cst_13 = arith.constant dense<0.000000e+00> : vector<32x64xf32>
    %32 = tpu.matmul %25, %31, %cst_13 {dimension_numbers = #tpu.dot_dimension_numbers<[1], [0], [0], [1], [0, 0, 1, 1], [], []>} : vector<32x64xf32>, vector<64x64xf32>, vector<32x64xf32> -> vector<32x64xf32>
    %33 = arith.addf %30, %32 : vector<32x64xf32>
    %c0_14 = arith.constant 0 : index
    %c0_15 = arith.constant 0 : index
    %34 = vector.load %arg5[%c0_14, %c0_15] : memref<1x64xf32, #tpu.memory_space<vmem>>, vector<1x64xf32>
    %35 = vector.broadcast %34 : vector<1x64xf32> to vector<32x64xf32>
    %36 = arith.addf %33, %35 : vector<32x64xf32>
    %cst_16 = arith.constant 0.000000e+00 : f32
    %37 = vector.broadcast %cst_16 : f32 to vector<32x64xf32>
    %38 = arith.cmpf ogt, %36, %37 : vector<32x64xf32>
    %cst_17 = arith.constant 0.00999999977 : f32
    %39 = vector.broadcast %cst_17 : f32 to vector<32x64xf32>
    %40 = arith.mulf %39, %36 : vector<32x64xf32>
    %41 = arith.select %38, %36, %40 : vector<32x64xi1>, vector<32x64xf32>
    %c0_18 = arith.constant 0 : index
    %c0_19 = arith.constant 0 : index
    %42 = vector.load %arg6[%c0_18, %c0_19] : memref<64x128xf32, #tpu.memory_space<vmem>>, vector<64x128xf32>
    %cst_20 = arith.constant dense<0.000000e+00> : vector<32x128xf32>
    %43 = tpu.matmul %41, %42, %cst_20 {dimension_numbers = #tpu.dot_dimension_numbers<[1], [0], [0], [1], [0, 0, 1, 1], [], []>} : vector<32x64xf32>, vector<64x128xf32>, vector<32x128xf32> -> vector<32x128xf32>
    %c0_21 = arith.constant 0 : index
    %c0_22 = arith.constant 0 : index
    %44 = vector.load %arg7[%c0_21, %c0_22] : memref<64x128xf32, #tpu.memory_space<vmem>>, vector<64x128xf32>
    %cst_23 = arith.constant dense<0.000000e+00> : vector<32x128xf32>
    %45 = tpu.matmul %0, %44, %cst_23 {dimension_numbers = #tpu.dot_dimension_numbers<[1], [0], [0], [1], [0, 0, 1, 1], [], []>} : vector<32x64xf32>, vector<64x128xf32>, vector<32x128xf32> -> vector<32x128xf32>
    %46 = arith.addf %43, %45 : vector<32x128xf32>
    %c0_24 = arith.constant 0 : index
    %c0_25 = arith.constant 0 : index
    %47 = vector.load %arg8[%c0_24, %c0_25] : memref<1x128xf32, #tpu.memory_space<vmem>>, vector<1x128xf32>
    %48 = vector.broadcast %47 : vector<1x128xf32> to vector<32x128xf32>
    %49 = arith.addf %46, %48 : vector<32x128xf32>
    %c0_26 = arith.constant 0 : index
    %c0_27 = arith.constant 0 : index
    %50 = vector.load %arg9[%c0_26, %c0_27] : memref<32x128xf32, #tpu.memory_space<vmem>>, vector<32x128xf32>
    tpu.vector_store %arg9[%c0_26, %c0_27], %49 {strides = array<i32>} : memref<32x128xf32, #tpu.memory_space<vmem>>, vector<32x128xf32>,
    return
  }
  func.func @transform_0(%arg0: i32) -> (i32, i32) {
    %c0_i32 = arith.constant 0 : i32
    %c0_i32_0 = arith.constant 0 : i32
    return %arg0, %c0_i32 : i32, i32
  }
  func.func @transform_1(%arg0: i32) -> (i32, i32) {
    %c0_i32 = arith.constant 0 : i32
    %c0_i32_0 = arith.constant 0 : i32
    %c0_i32_1 = arith.constant 0 : i32
    return %c0_i32, %c0_i32_0 : i32, i32
  }
  func.func @transform_2(%arg0: i32) -> (i32, i32) {
    %c0_i32 = arith.constant 0 : i32
    %c0_i32_0 = arith.constant 0 : i32
    %c0_i32_1 = arith.constant 0 : i32
    return %c0_i32, %c0_i32_0 : i32, i32
  }
  func.func @transform_3(%arg0: i32) -> (i32, i32) {
    %c0_i32 = arith.constant 0 : i32
    %c0_i32_0 = arith.constant 0 : i32
    %c0_i32_1 = arith.constant 0 : i32
    return %c0_i32, %c0_i32_0 : i32, i32
  }
  func.func @transform_4(%arg0: i32) -> (i32, i32) {
    %c0_i32 = arith.constant 0 : i32
    %c0_i32_0 = arith.constant 0 : i32
    %c0_i32_1 = arith.constant 0 : i32
    return %c0_i32, %c0_i32_0 : i32, i32
  }
  func.func @transform_5(%arg0: i32) -> (i32, i32) {
    %c0_i32 = arith.constant 0 : i32
    %c0_i32_0 = arith.constant 0 : i32
    %c0_i32_1 = arith.constant 0 : i32
    return %c0_i32, %c0_i32_0 : i32, i32
  }
  func.func @transform_6(%arg0: i32) -> (i32, i32) {
    %c0_i32 = arith.constant 0 : i32
    %c0_i32_0 = arith.constant 0 : i32
    %c0_i32_1 = arith.constant 0 : i32
    return %c0_i32, %c0_i32_0 : i32, i32
  }
  func.func @transform_7(%arg0: i32) -> (i32, i32) {
    %c0_i32 = arith.constant 0 : i32
    %c0_i32_0 = arith.constant 0 : i32
    %c0_i32_1 = arith.constant 0 : i32
    return %c0_i32, %c0_i32_0 : i32, i32
  }
  func.func @transform_8(%arg0: i32) -> (i32, i32) {
    %c0_i32 = arith.constant 0 : i32
    %c0_i32_0 = arith.constant 0 : i32
    return %arg0, %c0_i32 : i32, i32
  }
}

</mosaic_0001>

<bundles_post_ra>
// kernel: residual_block.1
= control target key start
LH: loop header
LB: loop body
LE: loop exit
PB: predicated region body
PF: predicated region fallthrough
CT: control target
= control target key end

     0   :  { %v33_v0 = vlaneseq  ;;  %vm136_vm2 = vcmask 523264   ;;  %s1167_s2 = inlined_call_operand.vmem [shape: f32[64,64], index: 2, kind: input, shape index: {}]   ;;  %s1168_s1 = inlined_call_operand.vmem [shape: f32[64,64], index: 1, kind: input, shape index: {}]   ;;  %s1169_s0 = inlined_call_operand.vmem [shape: f32[32,64], index: 0, kind: input, shape index: {}]   ;;  %s1170_s3 = inlined_call_operand.vmem [shape: f32[64,64], index: 3, kind: input, shape index: {}]   ;;  %s1171_s6 = inlined_call_operand.vmem [shape: f32[64,128], index: 6, kind: input, shape index: {}]   ;;  %s1172_s5 = inlined_call_operand.vmem [shape: f32[64,128], index: 5, kind: input, shape index: {}]   ;;  %s1173_s4 = inlined_call_operand.vmem [shape: f32[1,64], index: 4, kind: input, shape index: {}]   ;;  %s1174_s7 = inlined_call_operand.vmem [shape: f32[1,128], index: 7, kind: input, shape index: {}]   ;;  %s1175_s8 = inlined_call_operand.vmem [shape: f32[32,128], index: 8, kind: output, shape index: {}]  }
   0x1   :  { %v135_v1 = vld [vmem:[%s1167_s2 + $0x38] sm:$0xff]  ;;  %v134_v3 = vld [vmem:[%s1167_s2 + $0x30] sm:$0xff]  ;;  %v133_v5 = vld [vmem:[%s1167_s2 + $0x28] sm:$0xff] }
   0x2   :  { %v127_v2 = vld [vmem:[%s1168_s1 + $0x38] sm:$0xff]  ;;  %762 = vmatprep.subr.mxu0 %v135_v1  ;;  %v126_v4 = vld [vmem:[%s1168_s1 + $0x30] sm:$0xff]  ;;  %v125_v6 = vld [vmem:[%s1168_s1 + $0x28] sm:$0xff]  ;;  %v951_v7 = vshrl.u32 %v33_v0, 7 }
   0x3   :  { %784 = vmatprep.subr.mxu1 %v127_v2  ;;  %763 = vmatpush3.msra.mxu0 %v135_v1  ;;  %v132_v8 = vld [vmem:[%s1167_s2 + $0x20] sm:$0xff]  ;;  %v967_v11 = vld [vmem:[%s1169_s0 + $0x18] sm:$0xff]  ;;  %v130_v15 = vld [vmem:[%s1167_s2 + $0x10] sm:$0xff] }
   0x4   :  { %785 = vmatpush3.msra.mxu1 %v127_v2  ;;  %764 = vmatprep.subr.mxu0 %v134_v3  ;;  %v124_v9 = vld [vmem:[%s1168_s1 + $0x20] sm:$0xff]  ;;  %v131_v12 = vld [vmem:[%s1167_s2 + $0x18] sm:$0xff]  ;;  %v36_v14 = vadd.s32 16, %v951_v7  ;;  %v42_v16 = vand.u32 15, %v951_v7  ;;  %v93_v18 = vrot.slane %v967_v11, 7  ;;  %v122_v19 = vld [vmem:[%s1168_s1 + $0x10] sm:$0xff] }
   0x5   :  { %786 = vmatprep.subr.mxu1 %v126_v4  ;;  %765 = vmatpush3.msra.mxu0 %v134_v3  ;;  %v962_v10 = vld [vmem:[%s1169_s0] sm:$0xff]  ;;  %v123_v13 = vld [vmem:[%s1168_s1 + $0x18] sm:$0xff]  ;;  %vm94_vm0 = vcmp.lt.s32.totalorder %v951_v7, 1  ;;  %v989_v20 = vld [vmem:[%s1169_s0 + $0x8] sm:$0xff]  ;;  %vm111_vm4 = vcmp.lt.s32.totalorder %v951_v7, 7  ;;  %v35_v44 = vadd.s32 8, %v951_v7 }
   0x6   :  { %787 = vmatpush3.msra.mxu1 %v126_v4  ;;  %766 = vmatprep.subr.mxu0 %v133_v5  ;;  %v90_v17 = vrot.slane %v962_v10, 7  ;;  %v994_v21 = vld [vmem:[%s1169_s0 + $0x10] sm:$0xff]  ;;  %v129_v22 = vld [vmem:[%s1167_s2 + $0x8] sm:$0xff]  ;;  %v56_v24 = vand.u32 15, %v36_v14  ;;  %vm1003_vm1 = vcmp.eq.s32.totalorder %v42_v16, 0  ;;  %v91_v28 = vrot.slane %v989_v20, 7 }
   0x7   :  { %788 = vmatprep.subr.mxu1 %v125_v6  ;;  %767 = vmatpush3.msra.mxu0 %v133_v5  ;;  %v121_v23 = vld [vmem:[%s1168_s1 + $0x8] sm:$0xff]  ;;  %v92_v25 = vrot.slane %v994_v21, 7  ;;  %v128_v29 = vld [vmem:[%s1167_s2] sm:$0xff]  ;;  %v338_v35 = vld [vmem:[%s1170_s3 + $0x38] sm:$0xff]  ;;  %v107_v37 = vrot.slane %v962_v10, 1  ;;  %v108_v38 = vrot.slane %v989_v20, 1 }
   0x8   :  { %789 = vmatpush3.msra.mxu1 %v125_v6  ;;  %768 = vmatprep.subr.mxu0 %v132_v8  ;;  %v98_v27 = vsel %vm94_vm0, %v93_v18, %v90_v17  ;;  %v120_v30 = vld [vmem:[%s1168_s1] sm:$0xff]  ;;  %vm1019_vm3 = vcmp.eq.s32.totalorder %v56_v24, 0  ;;  %v97_v34 = vsel %vm94_vm0, %v90_v17, %v91_v28  ;;  %v337_v39 = vld [vmem:[%s1170_s3 + $0x30] sm:$0xff]  ;;  %v478_v40 = vld [vmem:[%s1171_s6 + $0x38] sm:$0xff]  ;;  %v109_v47 = vrot.slane %v994_v21, 1 }
   0x9   :  { %790 = vmatprep.subr.mxu1 %v124_v9  ;;  %769 = vmatpush3.msra.mxu0 %v132_v8  ;;  %v99_v31 = vsel %vm1003_vm1, %v962_v10, %v98_v27  ;;  %v96_v33 = vsel %vm94_vm0, %v91_v28, %v92_v25  ;;  %v95_v41 = vsel %vm94_vm0, %v92_v25, %v93_v18  ;;  %v336_v42 = vld [vmem:[%s1170_s3 + $0x28] sm:$0xff]  ;;  %v335_v45 = vld [vmem:[%s1170_s3 + $0x20] sm:$0xff]  ;;  %v334_v46 = vld [vmem:[%s1170_s3 + $0x18] sm:$0xff]  ;;  %v49_v48 = vand.u32 15, %v35_v44 }
   0xa   :  { %791 = vmatpush3.msra.mxu1 %v124_v9  ;;  %770 = vmatprep.subr.mxu0 %v131_v12  ;;  %v101_v36 = vsel %vm1019_vm3, %v994_v21, %v96_v33  ;;  %v114_v43 = vsel %vm111_vm4, %v107_v37, %v108_v38  ;;  %v37_v49 = vadd.s32 24, %v951_v7  ;;  %v333_v50 = vld [vmem:[%s1170_s3 + $0x10] sm:$0xff]  ;;  %v332_v51 = vld [vmem:[%s1170_s3 + $0x8] sm:$0xff]  ;;  %v113_v52 = vsel %vm111_vm4, %v108_v38, %v109_v47  ;;  %v331_v55 = vld [vmem:[%s1170_s3] sm:$0xff] }
   0xb   :  { %792 = vmatprep.subr.mxu1 %v123_v13  ;;  %771 = vmatpush3.msra.mxu0 %v131_v12  ;;  %vm104_vm5 = vcmp.eq.s32.totalorder %v49_v48, 15  ;;  %v110_v53 = vrot.slane %v967_v11, 1  ;;  %v477_v60 = vld [vmem:[%s1171_s6 + $0x30] sm:$0xff]  ;;  %v476_v61 = vld [vmem:[%s1171_s6 + $0x28] sm:$0xff]  ;;  %v475_v62 = vld [vmem:[%s1171_s6 + $0x20] sm:$0xff] }
   0xc   :  { %793 = vmatpush3.msra.mxu1 %v123_v13  ;;  %772 = vmatprep.subr.mxu0 %v130_v15  ;;  %v63_v54 = vand.u32 15, %v37_v49  ;;  %v117_v56 = vsel %vm104_vm5, %v989_v20, %v113_v52  ;;  %v474_v63 = vld [vmem:[%s1171_s6 + $0x18] sm:$0xff]  ;;  %v473_v0 = vld [vmem:[%s1171_s6 + $0x10] sm:$0xff]  ;;  %v472_v2 = vld [vmem:[%s1171_s6 + $0x8] sm:$0xff] }
   0xd   :  { %794 = vmatprep.subr.mxu1 %v122_v19  ;;  %773 = vmatpush3.msra.mxu0 %v130_v15  ;;  %v112_v57 = vsel %vm111_vm4, %v109_v47, %v110_v53  ;;  %v115_v58 = vsel %vm111_vm4, %v110_v53, %v107_v37  ;;  %v470_v1 = vld [vmem:[%s1172_s5 + $0x38] sm:$0xff]  ;;  %v469_v3 = vld [vmem:[%s1172_s5 + $0x30] sm:$0xff]  ;;  %v468_v4 = vld [vmem:[%s1172_s5 + $0x28] sm:$0xff] }
   0xe   :  { %795 = vmatpush3.msra.mxu1 %v122_v19  ;;  %774 = vmatprep.subr.mxu0 %v129_v22  ;;  %vm106_vm6 = vcmp.eq.s32.totalorder %v63_v54, 15  ;;  %v471_v5 = vld [vmem:[%s1171_s6] sm:$0xff]  ;;  %v466_v7 = vld [vmem:[%s1172_s5 + $0x18] sm:$0xff]  ;;  %v465_v8 = vld [vmem:[%s1172_s5 + $0x10] sm:$0xff] }
   0xf   :  { %796 = vmatprep.subr.mxu1 %v121_v23  ;;  %775 = vmatpush3.msra.mxu0 %v129_v22  ;;  %v119_v59 = vsel %vm106_vm6, %v967_v11, %v115_v58  ;;  %v467_v6 = vld [vmem:[%s1172_s5 + $0x20] sm:$0xff]  ;;  %v464_v9 = vld [vmem:[%s1172_s5 + $0x8] sm:$0xff] }
  0x10   :  { %797 = vmatpush3.msra.mxu1 %v121_v23  ;;  %776 = vmatprep.subr.mxu0 %v128_v29  ;;  %v701_v48 = vld [vmem:[%s1174_s7] ss:$0 sm:$0xff] }
  0x11   :  { %798 = vmatprep.subr.mxu1 %v120_v30  ;;  %777 = vmatpush3.msra.mxu0 %v128_v29 }
  0x12   :  { %778 = vmatprep.mubr.msk.f32.mxu0 %vm136_vm2, %v962_v10  ;;  %799 = vmatpush3.msra.mxu1 %v120_v30 }
  0x13   :  { %800 = vmatprep.mubr.msk.f32.mxu1 %vm136_vm2, %v99_v31  ;;  %779 = vmatmul.mubr.msk.f32.vlgmr.msra.gmra.mxu0 %vm136_vm2, %v989_v20 }
  0x14   :  { %801 = vmatmul.mubr.msk.f32.vlgmr.msra.gmra.mxu1 %vm136_vm2, %v97_v34  ;;  %806 = vmatprep.subr.mxu0 %v338_v35 }
  0x15   :  { %781 = vmatprep.mubr.msk.f32.mxu0 %vm136_vm2, %v994_v21  ;;  %807 = vmatpush3.msra.mxu0 %v338_v35 }
  0x16   :  { %803 = vmatprep.mubr.msk.f32.mxu1 %vm136_vm2, %v101_v36  ;;  %808 = vmatprep.subr.mxu0 %v337_v39 }
  0x17   :  { %828 = vmatprep.subr.mxu1 %v478_v40  ;;  %809 = vmatpush3.msra.mxu0 %v337_v39 }
  0x18   :  { %804 = vmatmul.mubr.msk.f32.gmra.mxu1 %vm136_vm2, %v95_v41  ;;  %810 = vmatprep.subr.mxu0 %v336_v42 }
  0x19   :  { %782 = vmatmul.mubr.msk.f32.gmra.mxu0 %vm136_vm2, %v967_v11  ;;  %829 = vmatpush3.msra.mxu1 %v478_v40 }
  0x1a   :  { %811 = vmatpush3.msra.mxu0 %v336_v42  ;;  %822 = vmatprep.mubr.msk.f32.mxu0 %vm136_vm2, %v114_v43 }
  0x1b   :  { %812 = vmatprep.subr.mxu0 %v335_v45  ;;  %844 = vmatprep.mubr.msk.f32.mxu1 %vm136_vm2, %v962_v10  ;;  %v463_v10 = vld [vmem:[%s1172_s5] sm:$0xff] }
  0x1c   :  { %813 = vmatpush3.msra.mxu0 %v335_v45  ;;  %830 = vmatprep.subr.mxu1 %v477_v60 }
  0x1d   :  { %814 = vmatprep.subr.mxu0 %v334_v46  ;;  %831 = vmatpush3.msra.mxu1 %v477_v60 }
  0x1e   :  { %815 = vmatpush3.msra.mxu0 %v334_v46  ;;  %832 = vmatprep.subr.mxu1 %v476_v61 }
  0x1f   :  { %816 = vmatprep.subr.mxu0 %v333_v50  ;;  %833 = vmatpush3.msra.mxu1 %v476_v61 }
  0x20   :  { %817 = vmatpush3.msra.mxu0 %v333_v50  ;;  %834 = vmatprep.subr.mxu1 %v475_v62 }
  0x21   :  { %818 = vmatprep.subr.mxu0 %v332_v51  ;;  %835 = vmatpush3.msra.mxu1 %v475_v62 }
  0x22   :  { %819 = vmatpush3.msra.mxu0 %v332_v51  ;;  %836 = vmatprep.subr.mxu1 %v474_v63 }
  0x23   :  { %820 = vmatprep.subr.mxu0 %v331_v55  ;;  %837 = vmatpush3.msra.mxu1 %v474_v63 }
  0x24   :  { %821 = vmatpush3.msra.mxu0 %v331_v55  ;;  %838 = vmatprep.subr.mxu1 %v473_v0 }
  0x25   :  { %823 = vmatmul.mubr.msk.f32.vlgmr.msra.gmra.mxu0 %vm136_vm2, %v117_v56  ;;  %850 = vmatprep.subr.mxu0 %v470_v1 }
  0x26   :  { %825 = vmatprep.mubr.msk.f32.mxu0 %vm136_vm2, %v112_v57  ;;  %851 = vmatpush3.msra.mxu0 %v470_v1 }
  0x27   :  { %839 = vmatpush3.msra.mxu1 %v473_v0  ;;  %852 = vmatprep.subr.mxu0 %v469_v3 }
  0x28   :  { %840 = vmatprep.subr.mxu1 %v472_v2  ;;  %853 = vmatpush3.msra.mxu0 %v469_v3 }
  0x29   :  { %826 = vmatmul.mubr.msk.f32.gmra.mxu0 %vm136_vm2, %v119_v59  ;;  %841 = vmatpush3.msra.mxu1 %v472_v2 }
  0x2a   :  { %854 = vmatprep.subr.mxu0 %v468_v4  ;;  %842 = vmatprep.subr.mxu1 %v471_v5 }
  0x2b   :  { %855 = vmatpush3.msra.mxu0 %v468_v4  ;;  %843 = vmatpush3.msra.mxu1 %v471_v5 }
  0x2c   :  { %845 = vmatmul.mubr.msk.f32.vlgmr.msra.gmra.mxu1 %vm136_vm2, %v989_v20  ;;  %872 = vmatprep.subr.mxu1 %v470_v1  ;;  %v692_v20 = vld [vmem:[%s1173_s4] ss:$0 sm:$0xff] }
  0x2d   :  { %880 = vmatpush3.msra.mxu1 %v470_v1  ;;  %847 = vmatprep.mubr.msk.f32.mxu1 %vm136_vm2, %v994_v21 }
  0x2e   :  { %873 = vmatprep.subr.mxu1 %v469_v3  ;;  %856 = vmatprep.subr.mxu0 %v467_v6 }
  0x2f   :  { %881 = vmatpush3.msra.mxu1 %v469_v3  ;;  %857 = vmatpush3.msra.mxu0 %v467_v6 }
  0x30   :  { %874 = vmatprep.subr.mxu1 %v468_v4  ;;  %858 = vmatprep.subr.mxu0 %v466_v7 }
  0x31   :  { %882 = vmatpush3.msra.mxu1 %v468_v4  ;;  %859 = vmatpush3.msra.mxu0 %v466_v7 }
  0x32   :  { %875 = vmatprep.subr.mxu1 %v467_v6  ;;  %860 = vmatprep.subr.mxu0 %v465_v8 }
  0x33   :  { %883 = vmatpush3.msra.mxu1 %v467_v6  ;;  %861 = vmatpush3.msra.mxu0 %v465_v8 }
  0x34   :  { %876 = vmatprep.subr.mxu1 %v466_v7  ;;  %862 = vmatprep.subr.mxu0 %v464_v9 }
  0x35   :  { %884 = vmatpush3.msra.mxu1 %v466_v7  ;;  %863 = vmatpush3.msra.mxu0 %v464_v9 }
  0x36   :  { %848 = vmatmul.mubr.msk.f32.gmra.mxu1 %vm136_vm2, %v967_v11  ;;  %877 = vmatprep.subr.mxu1 %v465_v8 }
  0x37   :  { %864 = vmatprep.subr.mxu0 %v463_v10  ;;  %885 = vmatpush3.msra.mxu1 %v465_v8 }
  0x38   :  { %865 = vmatpush3.msra.mxu0 %v463_v10  ;;  %878 = vmatprep.subr.mxu1 %v464_v9 }
  0x39   :  { %886 = vmatpush3.msra.mxu1 %v464_v9 }
  0x3a   :  { %879 = vmatprep.subr.mxu1 %v463_v10 }
  0x3b   :  { %887 = vmatpush3.msra.mxu1 %v463_v10 }
  0xd3   :  { %v780_v12 = vpop.f32.mrf.mxu0 }
  0xd4   :  { %v802_v13 = vpop.f32.mrf.mxu1 }
  0xd5   :  { %v215_v14 = vpop.f32.mrf.mxu0  ;;  %v318_v11 = vadd.f32 %v802_v13, %v780_v12 }
  0xd6   :  { %v312_v16 = vpop.f32.mrf.mxu1 }
  0xd7   :  { %v313_v21 = vadd.f32 %v312_v16, %v215_v14 }
  0xd8   :  { %v805_v17 = vpop.f32.mrf.mxu1 }
  0xd9   :  { %v783_v15 = vpop.f32.mrf.mxu0 }
  0xda   :  { %v322_v23 = vpop.f32.mrf.mxu1  ;;  %v328_v25 = vadd.f32 %v805_v17, %v783_v15 }
  0xdb   :  { %v225_v18 = vpop.f32.mrf.mxu0 }
  0xdc   :  { %v323_v29 = vadd.f32 %v322_v23, %v225_v18 }
  0xe5   :  { %v824_v19 = vpop.f32.mrf.mxu0 }
  0xe6   :  { %v437_v22 = vadd.f32 %v824_v19, %v318_v11 }
  0xe7   :  { %v417_v24 = vpop.f32.mrf.mxu0 }
  0xe8   :  { %v448_v26 = vadd.f32 %v692_v20, %v437_v22  ;;  %v436_v27 = vadd.f32 %v417_v24, %v313_v21 }
  0xe9   :  { %v827_v28 = vpop.f32.mrf.mxu0 }
  0xea   :  { %v447_v30 = vadd.f32 %v692_v20, %v436_v27  ;;  %v439_v31 = vadd.f32 %v827_v28, %v328_v25  ;;  %v456_v32 = vmul.f32 0.01, %v448_v26  ;;  %vm452_vm7 = vcmp.gt.f32.partialorder %v448_v26, 0.0 }
  0xeb   :  { %v427_v33 = vpop.f32.mrf.mxu0 }
  0xec   :  { %v455_v34 = vmul.f32 0.01, %v447_v30  ;;  %v450_v35 = vadd.f32 %v692_v20, %v439_v31  ;;  %v438_v36 = vadd.f32 %v427_v33, %v323_v29  ;;  %vm451_vm8 = vcmp.gt.f32.partialorder %v447_v30, 0.0  ;;  %v846_v44 = vpop.f32.mrf.mxu1 }
  0xed   :  { %v460_v39 = vsel %vm452_vm7, %v448_v26, %v456_v32 }
  0xee   :  { %v449_v37 = vadd.f32 %v692_v20, %v438_v36  ;;  %v459_v38 = vsel %vm451_vm8, %v447_v30, %v455_v34  ;;  %v458_v40 = vmul.f32 0.01, %v450_v35  ;;  %vm454_vm9 = vcmp.gt.f32.partialorder %v450_v35, 0.0  ;;  %v545_v45 = vpop.f32.mrf.mxu1 }
  0xef   :  { %866 = vmatprep.mubr.msk.f32.mxu0 %vm136_vm2, %v459_v38 }
  0xf0   :  { %v457_v41 = vmul.f32 0.01, %v449_v37  ;;  %867 = vmatmul.mubr.msk.f32.vlgmr.msra.gmra.mxu0 %vm136_vm2, %v460_v39  ;;  %vm453_vm10 = vcmp.gt.f32.partialorder %v449_v37, 0.0  ;;  %v462_v43 = vsel %vm454_vm9, %v450_v35, %v458_v40 }
  0xf2   :  { %v461_v42 = vsel %vm453_vm10, %v449_v37, %v457_v41 }
  0xf3   :  { %869 = vmatprep.mubr.msk.f32.mxu1 %vm136_vm2, %v461_v42 }
  0xf4   :  { %870 = vmatmul.mubr.msk.f32.vlgmr.msra.gmra.mxu1 %vm136_vm2, %v462_v43 }
  0xf6   :  { %v849_v46 = vpop.f32.mrf.mxu1 }
  0xf8   :  { %v555_v50 = vpop.f32.mrf.mxu1 }
 0x1b0   :  { %v868_v47 = vpop.f32.mrf.mxu0 }
 0x1b1   :  { %v648_v49 = vadd.f32 %v868_v47, %v846_v44 }
 0x1b2   :  { %v642_v51 = vpop.f32.mrf.mxu0 }
 0x1b3   :  { %v669_v52 = vadd.f32 %v701_v48, %v648_v49  ;;  %v643_v53 = vadd.f32 %v642_v51, %v545_v45 }
 0x1b4   :  { %v871_v54 = vpop.f32.mrf.mxu1 }
 0x1b5   :  { %673 = vst [vmem:[%s1175_s8 + $0x8] sm:$0xff] %v669_v52  ;;  %v668_v55 = vadd.f32 %v701_v48, %v643_v53  ;;  %v658_v56 = vadd.f32 %v871_v54, %v849_v46 }
 0x1b6   :  { %v652_v57 = vpop.f32.mrf.mxu1 }
 0x1b7   :  { %672 = vst [vmem:[%s1175_s8] sm:$0xff] %v668_v55  ;;  %v671_v58 = vadd.f32 %v701_v48, %v658_v56  ;;  %v653_v59 = vadd.f32 %v652_v57, %v555_v50 }
 0x1b9   :  { %675 = vst [vmem:[%s1175_s8 + $0x18] sm:$0xff] %v671_v58  ;;  %v670_v60 = vadd.f32 %v701_v48, %v653_v59 }
 0x1bb   :  { %674 = vst [vmem:[%s1175_s8 + $0x10] sm:$0xff] %v670_v60 }

</bundles_post_ra>
